<compile_context>
chip_gen: v6e
topology: v6e:2x2x1
jax: 0.10.0
libtpu: 0.0.40
codegen_flags: <defaults>
</compile_context>

<pallas_src>
import functools

import jax
import jax.numpy as jnp
from jax.experimental import pallas as pl
from jax.experimental.pallas import tpu as pltpu


# ----------------------------- Pallas kernel --------------------------------
def fault_pred_kernel(
    x_ref,       # (TB, L)   VMEM  input signal tile
    cw_ref,      # (3, F)    SMEM  conv1d taps (read as scalars)
    cb_ref,      # (1, F)    VMEM  conv1d bias (added AFTER the max-pool)
    w1d_ref,     # (F, 64)   VMEM  fc1 rows multiplying the deep features
    w1k_ref,     # (4, 64)   VMEM  fc1 rows multiplying the 4 stats
    b1_ref,      # (1, 64)
    w2_ref,      # (64, 32)
    b2_ref,      # (1, 32)
    w3_ref,      # (32, 16)
    b3_ref,      # (1, 16)
    w4_ref,      # (16, 2)
    b4_ref,      # (1, 2)
    out_ref,     # (TB, 2)
):
    x = x_ref[...].astype(jnp.float32)                  # (TB, L)
    tb, length = x.shape
    F = cb_ref.shape[1]
    inv_len = 1.0 / float(length)

    # ---- knowledge-driven features: mean, var(ddof=0), max, min over L ----
    # two-pass variance (subtract mean first) -> no catastrophic cancellation.
    mean = jnp.sum(x, axis=1, keepdims=True) * inv_len            # (TB, 1)
    xc = x - mean
    var = jnp.sum(xc * xc, axis=1, keepdims=True) * inv_len       # (TB, 1)
    xmax = jnp.max(x, axis=1, keepdims=True)
    xmin = jnp.min(x, axis=1, keepdims=True)

    # ---- Conv1d(1 -> F, k=3, padding=1) + ReLU + global max-pool ----------
    # shifted copies (zero padding at the edges); roll shifts must be >= 0.
    col = jax.lax.broadcasted_iota(jnp.int32, (tb, length), 1)
    x_prev = jnp.where(col == 0, 0.0, pltpu.roll(x, 1, axis=1))                   # x[t-1]
    x_next = jnp.where(col == length - 1, 0.0, pltpu.roll(x, length - 1, axis=1))  # x[t+1]

    lane_f = jax.lax.broadcasted_iota(jnp.int32, (tb, F), 1)       # (TB, F)

    def chan(f, deep):
        # conv taps as SMEM scalars -> cheap scalar splats on the VPU
        w0 = cw_ref[0, f]
        w1 = cw_ref[1, f]
        w2 = cw_ref[2, f]
        y = x * w1 + x_prev * w0 + x_next * w2          # (TB, L), stays in vregs
        m = jnp.max(y, axis=1, keepdims=True)           # (TB, 1), XLU lane reduce
        return jnp.where(lane_f == f, m, deep)          # place into column f

    deep_raw = jax.lax.fori_loop(
        0, F, chan, jnp.zeros((tb, F), jnp.float32), unroll=True)

    # bias + ReLU AFTER the pool (exact; saves two passes over (TB,F,L))
    deep = jnp.maximum(deep_raw + cb_ref[...], 0.0)                # (TB, F)

    # ---- feature fusion + classifier MLP -----------------------------------
    # fused @ W1 == deep @ W1[:F] + mean*W1[F] + var*W1[F+1] + max*W1[F+2] + min*W1[F+3]
    h1 = jnp.dot(deep, w1d_ref[...], preferred_element_type=jnp.float32) + b1_ref[...]
    w1k = w1k_ref[...]
    h1 = (h1
          + mean * w1k[0:1, :]
          + var * w1k[1:2, :]
          + xmax * w1k[2:3, :]
          + xmin * w1k[3:4, :])
    h1 = jnp.maximum(h1, 0.0)

    h2 = jnp.maximum(
        jnp.dot(h1, w2_ref[...], preferred_element_type=jnp.float32) + b2_ref[...], 0.0)
    h3 = jnp.maximum(
        jnp.dot(h2, w3_ref[...], preferred_element_type=jnp.float32) + b3_ref[...], 0.0)
    out = jnp.dot(h3, w4_ref[...], preferred_element_type=jnp.float32) + b4_ref[...]

    out_ref[...] = out.astype(out_ref.dtype)                       # (TB, 2)


# ------------------------------ wrapper --------------------------------------
def _pick_tb(batch):
    """Largest sublane-aligned batch tile (<=512) dividing B, preferring >=2 grid steps."""
    for cand in (512, 256, 128, 64, 32, 16, 8):
        if batch % cand == 0 and batch // cand >= 2:
            return cand
    for cand in (512, 256, 128, 64, 32, 16, 8):
        if batch % cand == 0:
            return cand
    return batch  # full-array block (legal even if not a multiple of 8)


@functools.partial(jax.jit, static_argnames=("tb",))
def fault_prediction_forward(x, params, tb=None):
    """x: (B, L) float32 signal; params: dict of weights (see init_params)."""
    B, L = x.shape
    if tb is None:
        tb = _pick_tb(B)
    if B % tb != 0:
        raise ValueError(f"batch {B} must be divisible by batch tile {tb}")
    F = params["conv_b"].shape[1]

    # split the first FC layer so the kernel never forms a (TB, F+4) concat
    w1d = params["w1"][:F]          # (F, 64)
    w1k = params["w1"][F:]          # (4, 64)

    def vmem_full(shape):
        return pl.BlockSpec(shape, lambda i, _n=len(shape): (0,) * _n)

    in_specs = [
        pl.BlockSpec((tb, L), lambda i: (i, 0)),                     # x (tiled over batch)
        pl.BlockSpec(memory_space=pltpu.MemorySpace.SMEM),           # conv taps -> SMEM scalars
        vmem_full((1, F)),                                           # conv bias
        vmem_full((F, 64)), vmem_full((4, 64)), vmem_full((1, 64)),  # fc1 (split) + bias
        vmem_full((64, 32)), vmem_full((1, 32)),                     # fc2
        vmem_full((32, 16)), vmem_full((1, 16)),                     # fc3
        vmem_full((16, 2)), vmem_full((1, 2)),                       # fc4
    ]
    out_spec = pl.BlockSpec((tb, 2), lambda i: (i, 0))

    # explicit VMEM budget: ~double-buffered x tile + live shifted copies + headroom,
    # clamped so it stays under v7x's 64 MiB physical VMEM (and above v5e's 16 MiB default).
    vmem_limit = int(max(16 * 2**20, min(48 * 2**20, 8 * tb * L * 4 + 4 * 2**20)))

    return pl.pallas_call(
        fault_pred_kernel,
        out_shape=jax.ShapeDtypeStruct((B, 2), jnp.float32),
        grid=(B // tb,),
        in_specs=in_specs,
        out_specs=out_spec,
        compiler_params=pltpu.CompilerParams(
            dimension_semantics=("parallel",),
            vmem_limit_bytes=vmem_limit,
        ),
    )(
        x,
        params["conv_w"], params["conv_b"],
        w1d, w1k, params["b1"],
        params["w2"], params["b2"],
        params["w3"], params["b3"],
        params["w4"], params["b4"],
    )


# --------------------------- parameter init -----------------------------------
def init_params(key, deep_feature_dim):
    """Deterministic synthetic init mimicking PyTorch default U(-1/sqrt(fan_in), ...)."""
    F = deep_feature_dim

    def lin(k, fan_in, fan_out):
        kw, kb = jax.random.split(k)
        bound = 1.0 / jnp.sqrt(float(fan_in))
        w = jax.random.uniform(kw, (fan_in, fan_out), jnp.float32, -bound, bound)
        b = jax.random.uniform(kb, (1, fan_out), jnp.float32, -bound, bound)
        return w, b

    k_conv, k1, k2, k3, k4 = jax.random.split(key, 5)
    # Conv1d(1, F, 3): fan_in = in_channels * kernel_size = 3
    kcw, kcb = jax.random.split(k_conv)
    cbound = 1.0 / jnp.sqrt(3.0)
    conv_w = jax.random.uniform(kcw, (3, F), jnp.float32, -cbound, cbound)  # (tap, out)
    conv_b = jax.random.uniform(kcb, (1, F), jnp.float32, -cbound, cbound)

    w1, b1 = lin(k1, F + 4, 64)
    w2, b2 = lin(k2, 64, 32)
    w3, b3 = lin(k3, 32, 16)
    w4, b4 = lin(k4, 16, 2)

    return dict(conv_w=conv_w, conv_b=conv_b,
                w1=w1, b1=b1, w2=w2, b2=b2, w3=w3, b3=b3, w4=w4, b4=b4)


# ----------------------------- pure-JAX reference ------------------------------
def reference_forward(x, p):
    mean = jnp.mean(x, axis=1, keepdims=True)
    var = jnp.var(x, axis=1, keepdims=True)          # ddof=0, matches np.var
    xmax = jnp.max(x, axis=1, keepdims=True)
    xmin = jnp.min(x, axis=1, keepdims=True)
    kd = jnp.concatenate([mean, var, xmax, xmin], axis=1)

    xp = jnp.pad(x, ((0, 0), (1, 1)))                # zero padding = 1
    cw, cb = p["conv_w"], p["conv_b"]                # (3, F), (1, F)
    conv = (xp[:, None, :-2] * cw[0][None, :, None]
            + xp[:, None, 1:-1] * cw[1][None, :, None]
            + xp[:, None, 2:] * cw[2][None, :, None]
            + cb[0][None, :, None])
    deep = jnp.max(jnp.maximum(conv, 0.0), axis=-1)

    fused = jnp.concatenate([deep, kd], axis=1)
    h = jnp.maximum(fused @ p["w1"] + p["b1"], 0.0)
    h = jnp.maximum(h @ p["w2"] + p["b2"], 0.0)
    h = jnp.maximum(h @ p["w3"] + p["b3"], 0.0)
    return h @ p["w4"] + p["b4"]


# ----------------------------------- main --------------------------------------
if __name__ == "__main__":
    key = jax.random.PRNGKey(0)
    k_x, k_p = jax.random.split(key)

    B, L = 8, 128            # batch, input_length
    deep_feature_dim = 16

    x = jax.random.normal(k_x, (B, L), dtype=jnp.float32)
    params = init_params(k_p, deep_feature_dim)

    out = fault_prediction_forward(x, params)
    out = jax.block_until_ready(out)

    ref = reference_forward(x, params)
    assert out.shape == (B, 2)
    assert jnp.allclose(out, ref, atol=1e-4, rtol=1e-4), "mismatch vs reference"

    print("KERNEL_OK")
</pallas_src>

<mosaic_0001>
module attributes {stable_mosaic.version = 11 : i64} {
  func.func @fault_pred_kernel(%arg0: i32, %arg1: memref<8x128xf32, #tpu.memory_space<vmem>>, %arg2: memref<3x16xf32, #tpu.memory_space<smem>>, %arg3: memref<1x16xf32, #tpu.memory_space<vmem>>, %arg4: memref<16x64xf32, #tpu.memory_space<vmem>>, %arg5: memref<4x64xf32, #tpu.memory_space<vmem>>, %arg6: memref<1x64xf32, #tpu.memory_space<vmem>>, %arg7: memref<64x32xf32, #tpu.memory_space<vmem>>, %arg8: memref<1x32xf32, #tpu.memory_space<vmem>>, %arg9: memref<32x16xf32, #tpu.memory_space<vmem>>, %arg10: memref<1x16xf32, #tpu.memory_space<vmem>>, %arg11: memref<16x2xf32, #tpu.memory_space<vmem>>, %arg12: memref<1x2xf32, #tpu.memory_space<vmem>>, %arg13: memref<8x2xf32, #tpu.memory_space<vmem>>) attributes {dimension_semantics = [#tpu.dimension_semantics<parallel>], iteration_bounds = array<i64: 1>, scalar_prefetch = 0 : i64, scratch_operands = 0 : i64, tpu.core_type = #tpu.core_type<tc>, window_params = [{transform_indices = @transform_0, window_bounds = array<i64: 8, 128>}, {transform_indices = @transform_1, window_bounds = array<i64: 3, 16>}, {pipeline_mode = #tpu.pipeline_mode<synchronous>, transform_indices = @transform_2, window_bounds = array<i64: 1, 16>}, {pipeline_mode = #tpu.pipeline_mode<synchronous>, transform_indices = @transform_3, window_bounds = array<i64: 16, 64>}, {pipeline_mode = #tpu.pipeline_mode<synchronous>, transform_indices = @transform_4, window_bounds = array<i64: 4, 64>}, {pipeline_mode = #tpu.pipeline_mode<synchronous>, transform_indices = @transform_5, window_bounds = array<i64: 1, 64>}, {pipeline_mode = #tpu.pipeline_mode<synchronous>, transform_indices = @transform_6, window_bounds = array<i64: 64, 32>}, {pipeline_mode = #tpu.pipeline_mode<synchronous>, transform_indices = @transform_7, window_bounds = array<i64: 1, 32>}, {pipeline_mode = #tpu.pipeline_mode<synchronous>, transform_indices = @transform_8, window_bounds = array<i64: 32, 16>}, {pipeline_mode = #tpu.pipeline_mode<synchronous>, transform_indices = @transform_9, window_bounds = array<i64: 1, 16>}, {pipeline_mode = #tpu.pipeline_mode<synchronous>, transform_indices = @transform_10, window_bounds = array<i64: 16, 2>}, {pipeline_mode = #tpu.pipeline_mode<synchronous>, transform_indices = @transform_11, window_bounds = array<i64: 1, 2>}, {transform_indices = @transform_12, window_bounds = array<i64: 8, 2>}]} {
    %c0 = arith.constant 0 : index
    %c0_0 = arith.constant 0 : index
    %0 = vector.load %arg1[%c0, %c0_0] : memref<8x128xf32, #tpu.memory_space<vmem>>, vector<8x128xf32>
    %cst = arith.constant dense<0.000000e+00> : vector<8xf32>
    %1 = vector.multi_reduction <add>, %0, %cst [1] : vector<8x128xf32> to vector<8xf32>
    %2 = vector.shape_cast %1 : vector<8xf32> to vector<8x1xf32>
    %cst_1 = arith.constant 7.812500e-03 : f32
    %3 = vector.broadcast %cst_1 : f32 to vector<8x1xf32>
    %4 = arith.mulf %2, %3 : vector<8x1xf32>
    %5 = vector.broadcast %4 : vector<8x1xf32> to vector<8x128xf32>
    %6 = arith.subf %0, %5 : vector<8x128xf32>
    %7 = arith.mulf %6, %6 : vector<8x128xf32>
    %cst_2 = arith.constant dense<0.000000e+00> : vector<8xf32>
    %8 = vector.multi_reduction <add>, %7, %cst_2 [1] : vector<8x128xf32> to vector<8xf32>
    %9 = vector.shape_cast %8 : vector<8xf32> to vector<8x1xf32>
    %cst_3 = arith.constant 7.812500e-03 : f32
    %10 = vector.broadcast %cst_3 : f32 to vector<8x1xf32>
    %11 = arith.mulf %9, %10 : vector<8x1xf32>
    %cst_4 = arith.constant dense<0xFF800000> : vector<8xf32>
    %12 = vector.multi_reduction <maximumf>, %0, %cst_4 [1] : vector<8x128xf32> to vector<8xf32>
    %13 = vector.shape_cast %12 : vector<8xf32> to vector<8x1xf32>
    %cst_5 = arith.constant dense<0x7F800000> : vector<8xf32>
    %14 = vector.multi_reduction <minimumf>, %0, %cst_5 [1] : vector<8x128xf32> to vector<8xf32>
    %15 = vector.shape_cast %14 : vector<8xf32> to vector<8x1xf32>
    %16 = tpu.iota {dimensions = array<i32: 1>} : vector<8x128xi32>
    %c0_i32 = arith.constant 0 : i32
    %17 = vector.broadcast %c0_i32 : i32 to vector<8x128xi32>
    %18 = arith.cmpi eq, %16, %17 : vector<8x128xi32>
    %c1_i32 = arith.constant 1 : i32
    %19 = tpu.dynamic_rotate %0 by %c1_i32 dim 1 : vector<8x128xf32>, i32 -> vector<8x128xf32>
    %cst_6 = arith.constant 0.000000e+00 : f32
    %20 = vector.broadcast %cst_6 : f32 to vector<8x128xf32>
    %21 = arith.select %18, %20, %19 : vector<8x128xi1>, vector<8x128xf32>
    %c127_i32 = arith.constant 127 : i32
    %22 = vector.broadcast %c127_i32 : i32 to vector<8x128xi32>
    %23 = arith.cmpi eq, %16, %22 : vector<8x128xi32>
    %c127_i32_7 = arith.constant 127 : i32
    %24 = tpu.dynamic_rotate %0 by %c127_i32_7 dim 1 : vector<8x128xf32>, i32 -> vector<8x128xf32>
    %cst_8 = arith.constant 0.000000e+00 : f32
    %25 = vector.broadcast %cst_8 : f32 to vector<8x128xf32>
    %26 = arith.select %23, %25, %24 : vector<8x128xi1>, vector<8x128xf32>
    %27 = tpu.iota {dimensions = array<i32: 1>} : vector<8x16xi32>
    %cst_9 = arith.constant 0.000000e+00 : f32
    %28 = vector.broadcast %cst_9 : f32 to vector<8x16xf32>
    %c0_i32_10 = arith.constant 0 : i32
    %c0_11 = arith.constant 0 : index
    %29 = arith.index_cast %c0_i32_10 : i32 to index
    %30 = memref.load %arg2[%c0_11, %29] : memref<3x16xf32, #tpu.memory_space<smem>>
    %c1 = arith.constant 1 : index
    %31 = arith.index_cast %c0_i32_10 : i32 to index
    %32 = memref.load %arg2[%c1, %31] : memref<3x16xf32, #tpu.memory_space<smem>>
    %c2 = arith.constant 2 : index
    %33 = arith.index_cast %c0_i32_10 : i32 to index
    %34 = memref.load %arg2[%c2, %33] : memref<3x16xf32, #tpu.memory_space<smem>>
    %35 = vector.broadcast %32 : f32 to vector<8x128xf32>
    %36 = arith.mulf %0, %35 : vector<8x128xf32>
    %37 = vector.broadcast %30 : f32 to vector<8x128xf32>
    %38 = arith.mulf %21, %37 : vector<8x128xf32>
    %39 = arith.addf %36, %38 : vector<8x128xf32>
    %40 = vector.broadcast %34 : f32 to vector<8x128xf32>
    %41 = arith.mulf %26, %40 : vector<8x128xf32>
    %42 = arith.addf %39, %41 : vector<8x128xf32>
    %cst_12 = arith.constant dense<0xFF800000> : vector<8xf32>
    %43 = vector.multi_reduction <maximumf>, %42, %cst_12 [1] : vector<8x128xf32> to vector<8xf32>
    %44 = vector.shape_cast %43 : vector<8xf32> to vector<8x1xf32>
    %45 = vector.broadcast %c0_i32_10 : i32 to vector<8x16xi32>
    %46 = arith.cmpi eq, %27, %45 : vector<8x16xi32>
    %47 = vector.shape_cast %44 : vector<8x1xf32> to vector<8x1xf32>
    %48 = vector.broadcast %47 : vector<8x1xf32> to vector<8x16xf32>
    %49 = arith.select %46, %48, %28 : vector<8x16xi1>, vector<8x16xf32>
    %c1_i32_13 = arith.constant 1 : i32
    %c0_14 = arith.constant 0 : index
    %50 = arith.index_cast %c1_i32_13 : i32 to index
    %51 = memref.load %arg2[%c0_14, %50] : memref<3x16xf32, #tpu.memory_space<smem>>
    %c1_15 = arith.constant 1 : index
    %52 = arith.index_cast %c1_i32_13 : i32 to index
    %53 = memref.load %arg2[%c1_15, %52] : memref<3x16xf32, #tpu.memory_space<smem>>
    %c2_16 = arith.constant 2 : index
    %54 = arith.index_cast %c1_i32_13 : i32 to index
    %55 = memref.load %arg2[%c2_16, %54] : memref<3x16xf32, #tpu.memory_space<smem>>
    %56 = vector.broadcast %53 : f32 to vector<8x128xf32>
    %57 = arith.mulf %0, %56 : vector<8x128xf32>
    %58 = vector.broadcast %51 : f32 to vector<8x128xf32>
    %59 = arith.mulf %21, %58 : vector<8x128xf32>
    %60 = arith.addf %57, %59 : vector<8x128xf32>
    %61 = vector.broadcast %55 : f32 to vector<8x128xf32>
    %62 = arith.mulf %26, %61 : vector<8x128xf32>
    %63 = arith.addf %60, %62 : vector<8x128xf32>
    %cst_17 = arith.constant dense<0xFF800000> : vector<8xf32>
    %64 = vector.multi_reduction <maximumf>, %63, %cst_17 [1] : vector<8x128xf32> to vector<8xf32>
    %65 = vector.shape_cast %64 : vector<8xf32> to vector<8x1xf32>
    %66 = vector.broadcast %c1_i32_13 : i32 to vector<8x16xi32>
    %67 = arith.cmpi eq, %27, %66 : vector<8x16xi32>
    %68 = vector.shape_cast %65 : vector<8x1xf32> to vector<8x1xf32>
    %69 = vector.broadcast %68 : vector<8x1xf32> to vector<8x16xf32>
    %70 = arith.select %67, %69, %49 : vector<8x16xi1>, vector<8x16xf32>
    %c2_i32 = arith.constant 2 : i32
    %c0_18 = arith.constant 0 : index
    %71 = arith.index_cast %c2_i32 : i32 to index
    %72 = memref.load %arg2[%c0_18, %71] : memref<3x16xf32, #tpu.memory_space<smem>>
    %c1_19 = arith.constant 1 : index
    %73 = arith.index_cast %c2_i32 : i32 to index
    %74 = memref.load %arg2[%c1_19, %73] : memref<3x16xf32, #tpu.memory_space<smem>>
    %c2_20 = arith.constant 2 : index
    %75 = arith.index_cast %c2_i32 : i32 to index
    %76 = memref.load %arg2[%c2_20, %75] : memref<3x16xf32, #tpu.memory_space<smem>>
    %77 = vector.broadcast %74 : f32 to vector<8x128xf32>
    %78 = arith.mulf %0, %77 : vector<8x128xf32>
    %79 = vector.broadcast %72 : f32 to vector<8x128xf32>
    %80 = arith.mulf %21, %79 : vector<8x128xf32>
    %81 = arith.addf %78, %80 : vector<8x128xf32>
    %82 = vector.broadcast %76 : f32 to vector<8x128xf32>
    %83 = arith.mulf %26, %82 : vector<8x128xf32>
    %84 = arith.addf %81, %83 : vector<8x128xf32>
    %cst_21 = arith.constant dense<0xFF800000> : vector<8xf32>
    %85 = vector.multi_reduction <maximumf>, %84, %cst_21 [1] : vector<8x128xf32> to vector<8xf32>
    %86 = vector.shape_cast %85 : vector<8xf32> to vector<8x1xf32>
    %87 = vector.broadcast %c2_i32 : i32 to vector<8x16xi32>
    %88 = arith.cmpi eq, %27, %87 : vector<8x16xi32>
    %89 = vector.shape_cast %86 : vector<8x1xf32> to vector<8x1xf32>
    %90 = vector.broadcast %89 : vector<8x1xf32> to vector<8x16xf32>
    %91 = arith.select %88, %90, %70 : vector<8x16xi1>, vector<8x16xf32>
    %c3_i32 = arith.constant 3 : i32
    %c0_22 = arith.constant 0 : index
    %92 = arith.index_cast %c3_i32 : i32 to index
    %93 = memref.load %arg2[%c0_22, %92] : memref<3x16xf32, #tpu.memory_space<smem>>
    %c1_23 = arith.constant 1 : index
    %94 = arith.index_cast %c3_i32 : i32 to index
    %95 = memref.load %arg2[%c1_23, %94] : memref<3x16xf32, #tpu.memory_space<smem>>
    %c2_24 = arith.constant 2 : index
    %96 = arith.index_cast %c3_i32 : i32 to index
    %97 = memref.load %arg2[%c2_24, %96] : memref<3x16xf32, #tpu.memory_space<smem>>
    %98 = vector.broadcast %95 : f32 to vector<8x128xf32>
    %99 = arith.mulf %0, %98 : vector<8x128xf32>
    %100 = vector.broadcast %93 : f32 to vector<8x128xf32>
    %101 = arith.mulf %21, %100 : vector<8x128xf32>
    %102 = arith.addf %99, %101 : vector<8x128xf32>
    %103 = vector.broadcast %97 : f32 to vector<8x128xf32>
    %104 = arith.mulf %26, %103 : vector<8x128xf32>
    %105 = arith.addf %102, %104 : vector<8x128xf32>
    %cst_25 = arith.constant dense<0xFF800000> : vector<8xf32>
    %106 = vector.multi_reduction <maximumf>, %105, %cst_25 [1] : vector<8x128xf32> to vector<8xf32>
    %107 = vector.shape_cast %106 : vector<8xf32> to vector<8x1xf32>
    %108 = vector.broadcast %c3_i32 : i32 to vector<8x16xi32>
    %109 = arith.cmpi eq, %27, %108 : vector<8x16xi32>
    %110 = vector.shape_cast %107 : vector<8x1xf32> to vector<8x1xf32>
    %111 = vector.broadcast %110 : vector<8x1xf32> to vector<8x16xf32>
    %112 = arith.select %109, %111, %91 : vector<8x16xi1>, vector<8x16xf32>
    %c4_i32 = arith.constant 4 : i32
    %c0_26 = arith.constant 0 : index
    %113 = arith.index_cast %c4_i32 : i32 to index
    %114 = memref.load %arg2[%c0_26, %113] : memref<3x16xf32, #tpu.memory_space<smem>>
    %c1_27 = arith.constant 1 : index
    %115 = arith.index_cast %c4_i32 : i32 to index
    %116 = memref.load %arg2[%c1_27, %115] : memref<3x16xf32, #tpu.memory_space<smem>>
    %c2_28 = arith.constant 2 : index
    %117 = arith.index_cast %c4_i32 : i32 to index
    %118 = memref.load %arg2[%c2_28, %117] : memref<3x16xf32, #tpu.memory_space<smem>>
    %119 = vector.broadcast %116 : f32 to vector<8x128xf32>
    %120 = arith.mulf %0, %119 : vector<8x128xf32>
    %121 = vector.broadcast %114 : f32 to vector<8x128xf32>
    %122 = arith.mulf %21, %121 : vector<8x128xf32>
    %123 = arith.addf %120, %122 : vector<8x128xf32>
    %124 = vector.broadcast %118 : f32 to vector<8x128xf32>
    %125 = arith.mulf %26, %124 : vector<8x128xf32>
    %126 = arith.addf %123, %125 : vector<8x128xf32>
    %cst_29 = arith.constant dense<0xFF800000> : vector<8xf32>
    %127 = vector.multi_reduction <maximumf>, %126, %cst_29 [1] : vector<8x128xf32> to vector<8xf32>
    %128 = vector.shape_cast %127 : vector<8xf32> to vector<8x1xf32>
    %129 = vector.broadcast %c4_i32 : i32 to vector<8x16xi32>
    %130 = arith.cmpi eq, %27, %129 : vector<8x16xi32>
    %131 = vector.shape_cast %128 : vector<8x1xf32> to vector<8x1xf32>
    %132 = vector.broadcast %131 : vector<8x1xf32> to vector<8x16xf32>
    %133 = arith.select %130, %132, %112 : vector<8x16xi1>, vector<8x16xf32>
    %c5_i32 = arith.constant 5 : i32
    %c0_30 = arith.constant 0 : index
    %134 = arith.index_cast %c5_i32 : i32 to index
    %135 = memref.load %arg2[%c0_30, %134] : memref<3x16xf32, #tpu.memory_space<smem>>
    %c1_31 = arith.constant 1 : index
    %136 = arith.index_cast %c5_i32 : i32 to index
    %137 = memref.load %arg2[%c1_31, %136] : memref<3x16xf32, #tpu.memory_space<smem>>
    %c2_32 = arith.constant 2 : index
    %138 = arith.index_cast %c5_i32 : i32 to index
    %139 = memref.load %arg2[%c2_32, %138] : memref<3x16xf32, #tpu.memory_space<smem>>
    %140 = vector.broadcast %137 : f32 to vector<8x128xf32>
    %141 = arith.mulf %0, %140 : vector<8x128xf32>
    %142 = vector.broadcast %135 : f32 to vector<8x128xf32>
    %143 = arith.mulf %21, %142 : vector<8x128xf32>
    %144 = arith.addf %141, %143 : vector<8x128xf32>
    %145 = vector.broadcast %139 : f32 to vector<8x128xf32>
    %146 = arith.mulf %26, %145 : vector<8x128xf32>
    %147 = arith.addf %144, %146 : vector<8x128xf32>
    %cst_33 = arith.constant dense<0xFF800000> : vector<8xf32>
    %148 = vector.multi_reduction <maximumf>, %147, %cst_33 [1] : vector<8x128xf32> to vector<8xf32>
    %149 = vector.shape_cast %148 : vector<8xf32> to vector<8x1xf32>
    %150 = vector.broadcast %c5_i32 : i32 to vector<8x16xi32>
    %151 = arith.cmpi eq, %27, %150 : vector<8x16xi32>
    %152 = vector.shape_cast %149 : vector<8x1xf32> to vector<8x1xf32>
    %153 = vector.broadcast %152 : vector<8x1xf32> to vector<8x16xf32>
    %154 = arith.select %151, %153, %133 : vector<8x16xi1>, vector<8x16xf32>
    %c6_i32 = arith.constant 6 : i32
    %c0_34 = arith.constant 0 : index
    %155 = arith.index_cast %c6_i32 : i32 to index
    %156 = memref.load %arg2[%c0_34, %155] : memref<3x16xf32, #tpu.memory_space<smem>>
    %c1_35 = arith.constant 1 : index
    %157 = arith.index_cast %c6_i32 : i32 to index
    %158 = memref.load %arg2[%c1_35, %157] : memref<3x16xf32, #tpu.memory_space<smem>>
    %c2_36 = arith.constant 2 : index
    %159 = arith.index_cast %c6_i32 : i32 to index
    %160 = memref.load %arg2[%c2_36, %159] : memref<3x16xf32, #tpu.memory_space<smem>>
    %161 = vector.broadcast %158 : f32 to vector<8x128xf32>
    %162 = arith.mulf %0, %161 : vector<8x128xf32>
    %163 = vector.broadcast %156 : f32 to vector<8x128xf32>
    %164 = arith.mulf %21, %163 : vector<8x128xf32>
    %165 = arith.addf %162, %164 : vector<8x128xf32>
    %166 = vector.broadcast %160 : f32 to vector<8x128xf32>
    %167 = arith.mulf %26, %166 : vector<8x128xf32>
    %168 = arith.addf %165, %167 : vector<8x128xf32>
    %cst_37 = arith.constant dense<0xFF800000> : vector<8xf32>
    %169 = vector.multi_reduction <maximumf>, %168, %cst_37 [1] : vector<8x128xf32> to vector<8xf32>
    %170 = vector.shape_cast %169 : vector<8xf32> to vector<8x1xf32>
    %171 = vector.broadcast %c6_i32 : i32 to vector<8x16xi32>
    %172 = arith.cmpi eq, %27, %171 : vector<8x16xi32>
    %173 = vector.shape_cast %170 : vector<8x1xf32> to vector<8x1xf32>
    %174 = vector.broadcast %173 : vector<8x1xf32> to vector<8x16xf32>
    %175 = arith.select %172, %174, %154 : vector<8x16xi1>, vector<8x16xf32>
    %c7_i32 = arith.constant 7 : i32
    %c0_38 = arith.constant 0 : index
    %176 = arith.index_cast %c7_i32 : i32 to index
    %177 = memref.load %arg2[%c0_38, %176] : memref<3x16xf32, #tpu.memory_space<smem>>
    %c1_39 = arith.constant 1 : index
    %178 = arith.index_cast %c7_i32 : i32 to index
    %179 = memref.load %arg2[%c1_39, %178] : memref<3x16xf32, #tpu.memory_space<smem>>
    %c2_40 = arith.constant 2 : index
    %180 = arith.index_cast %c7_i32 : i32 to index
    %181 = memref.load %arg2[%c2_40, %180] : memref<3x16xf32, #tpu.memory_space<smem>>
    %182 = vector.broadcast %179 : f32 to vector<8x128xf32>
    %183 = arith.mulf %0, %182 : vector<8x128xf32>
    %184 = vector.broadcast %177 : f32 to vector<8x128xf32>
    %185 = arith.mulf %21, %184 : vector<8x128xf32>
    %186 = arith.addf %183, %185 : vector<8x128xf32>
    %187 = vector.broadcast %181 : f32 to vector<8x128xf32>
    %188 = arith.mulf %26, %187 : vector<8x128xf32>
    %189 = arith.addf %186, %188 : vector<8x128xf32>
    %cst_41 = arith.constant dense<0xFF800000> : vector<8xf32>
    %190 = vector.multi_reduction <maximumf>, %189, %cst_41 [1] : vector<8x128xf32> to vector<8xf32>
    %191 = vector.shape_cast %190 : vector<8xf32> to vector<8x1xf32>
    %192 = vector.broadcast %c7_i32 : i32 to vector<8x16xi32>
    %193 = arith.cmpi eq, %27, %192 : vector<8x16xi32>
    %194 = vector.shape_cast %191 : vector<8x1xf32> to vector<8x1xf32>
    %195 = vector.broadcast %194 : vector<8x1xf32> to vector<8x16xf32>
    %196 = arith.select %193, %195, %175 : vector<8x16xi1>, vector<8x16xf32>
    %c8_i32 = arith.constant 8 : i32
    %c0_42 = arith.constant 0 : index
    %197 = arith.index_cast %c8_i32 : i32 to index
    %198 = memref.load %arg2[%c0_42, %197] : memref<3x16xf32, #tpu.memory_space<smem>>
    %c1_43 = arith.constant 1 : index
    %199 = arith.index_cast %c8_i32 : i32 to index
    %200 = memref.load %arg2[%c1_43, %199] : memref<3x16xf32, #tpu.memory_space<smem>>
    %c2_44 = arith.constant 2 : index
    %201 = arith.index_cast %c8_i32 : i32 to index
    %202 = memref.load %arg2[%c2_44, %201] : memref<3x16xf32, #tpu.memory_space<smem>>
    %203 = vector.broadcast %200 : f32 to vector<8x128xf32>
    %204 = arith.mulf %0, %203 : vector<8x128xf32>
    %205 = vector.broadcast %198 : f32 to vector<8x128xf32>
    %206 = arith.mulf %21, %205 : vector<8x128xf32>
    %207 = arith.addf %204, %206 : vector<8x128xf32>
    %208 = vector.broadcast %202 : f32 to vector<8x128xf32>
    %209 = arith.mulf %26, %208 : vector<8x128xf32>
    %210 = arith.addf %207, %209 : vector<8x128xf32>
    %cst_45 = arith.constant dense<0xFF800000> : vector<8xf32>
    %211 = vector.multi_reduction <maximumf>, %210, %cst_45 [1] : vector<8x128xf32> to vector<8xf32>
    %212 = vector.shape_cast %211 : vector<8xf32> to vector<8x1xf32>
    %213 = vector.broadcast %c8_i32 : i32 to vector<8x16xi32>
    %214 = arith.cmpi eq, %27, %213 : vector<8x16xi32>
    %215 = vector.shape_cast %212 : vector<8x1xf32> to vector<8x1xf32>
    %216 = vector.broadcast %215 : vector<8x1xf32> to vector<8x16xf32>
    %217 = arith.select %214, %216, %196 : vector<8x16xi1>, vector<8x16xf32>
    %c9_i32 = arith.constant 9 : i32
    %c0_46 = arith.constant 0 : index
    %218 = arith.index_cast %c9_i32 : i32 to index
    %219 = memref.load %arg2[%c0_46, %218] : memref<3x16xf32, #tpu.memory_space<smem>>
    %c1_47 = arith.constant 1 : index
    %220 = arith.index_cast %c9_i32 : i32 to index
    %221 = memref.load %arg2[%c1_47, %220] : memref<3x16xf32, #tpu.memory_space<smem>>
    %c2_48 = arith.constant 2 : index
    %222 = arith.index_cast %c9_i32 : i32 to index
    %223 = memref.load %arg2[%c2_48, %222] : memref<3x16xf32, #tpu.memory_space<smem>>
    %224 = vector.broadcast %221 : f32 to vector<8x128xf32>
    %225 = arith.mulf %0, %224 : vector<8x128xf32>
    %226 = vector.broadcast %219 : f32 to vector<8x128xf32>
    %227 = arith.mulf %21, %226 : vector<8x128xf32>
    %228 = arith.addf %225, %227 : vector<8x128xf32>
    %229 = vector.broadcast %223 : f32 to vector<8x128xf32>
    %230 = arith.mulf %26, %229 : vector<8x128xf32>
    %231 = arith.addf %228, %230 : vector<8x128xf32>
    %cst_49 = arith.constant dense<0xFF800000> : vector<8xf32>
    %232 = vector.multi_reduction <maximumf>, %231, %cst_49 [1] : vector<8x128xf32> to vector<8xf32>
    %233 = vector.shape_cast %232 : vector<8xf32> to vector<8x1xf32>
    %234 = vector.broadcast %c9_i32 : i32 to vector<8x16xi32>
    %235 = arith.cmpi eq, %27, %234 : vector<8x16xi32>
    %236 = vector.shape_cast %233 : vector<8x1xf32> to vector<8x1xf32>
    %237 = vector.broadcast %236 : vector<8x1xf32> to vector<8x16xf32>
    %238 = arith.select %235, %237, %217 : vector<8x16xi1>, vector<8x16xf32>
    %c10_i32 = arith.constant 10 : i32
    %c0_50 = arith.constant 0 : index
    %239 = arith.index_cast %c10_i32 : i32 to index
    %240 = memref.load %arg2[%c0_50, %239] : memref<3x16xf32, #tpu.memory_space<smem>>
    %c1_51 = arith.constant 1 : index
    %241 = arith.index_cast %c10_i32 : i32 to index
    %242 = memref.load %arg2[%c1_51, %241] : memref<3x16xf32, #tpu.memory_space<smem>>
    %c2_52 = arith.constant 2 : index
    %243 = arith.index_cast %c10_i32 : i32 to index
    %244 = memref.load %arg2[%c2_52, %243] : memref<3x16xf32, #tpu.memory_space<smem>>
    %245 = vector.broadcast %242 : f32 to vector<8x128xf32>
    %246 = arith.mulf %0, %245 : vector<8x128xf32>
    %247 = vector.broadcast %240 : f32 to vector<8x128xf32>
    %248 = arith.mulf %21, %247 : vector<8x128xf32>
    %249 = arith.addf %246, %248 : vector<8x128xf32>
    %250 = vector.broadcast %244 : f32 to vector<8x128xf32>
    %251 = arith.mulf %26, %250 : vector<8x128xf32>
    %252 = arith.addf %249, %251 : vector<8x128xf32>
    %cst_53 = arith.constant dense<0xFF800000> : vector<8xf32>
    %253 = vector.multi_reduction <maximumf>, %252, %cst_53 [1] : vector<8x128xf32> to vector<8xf32>
    %254 = vector.shape_cast %253 : vector<8xf32> to vector<8x1xf32>
    %255 = vector.broadcast %c10_i32 : i32 to vector<8x16xi32>
    %256 = arith.cmpi eq, %27, %255 : vector<8x16xi32>
    %257 = vector.shape_cast %254 : vector<8x1xf32> to vector<8x1xf32>
    %258 = vector.broadcast %257 : vector<8x1xf32> to vector<8x16xf32>
    %259 = arith.select %256, %258, %238 : vector<8x16xi1>, vector<8x16xf32>
    %c11_i32 = arith.constant 11 : i32
    %c0_54 = arith.constant 0 : index
    %260 = arith.index_cast %c11_i32 : i32 to index
    %261 = memref.load %arg2[%c0_54, %260] : memref<3x16xf32, #tpu.memory_space<smem>>
    %c1_55 = arith.constant 1 : index
    %262 = arith.index_cast %c11_i32 : i32 to index
    %263 = memref.load %arg2[%c1_55, %262] : memref<3x16xf32, #tpu.memory_space<smem>>
    %c2_56 = arith.constant 2 : index
    %264 = arith.index_cast %c11_i32 : i32 to index
    %265 = memref.load %arg2[%c2_56, %264] : memref<3x16xf32, #tpu.memory_space<smem>>
    %266 = vector.broadcast %263 : f32 to vector<8x128xf32>
    %267 = arith.mulf %0, %266 : vector<8x128xf32>
    %268 = vector.broadcast %261 : f32 to vector<8x128xf32>
    %269 = arith.mulf %21, %268 : vector<8x128xf32>
    %270 = arith.addf %267, %269 : vector<8x128xf32>
    %271 = vector.broadcast %265 : f32 to vector<8x128xf32>
    %272 = arith.mulf %26, %271 : vector<8x128xf32>
    %273 = arith.addf %270, %272 : vector<8x128xf32>
    %cst_57 = arith.constant dense<0xFF800000> : vector<8xf32>
    %274 = vector.multi_reduction <maximumf>, %273, %cst_57 [1] : vector<8x128xf32> to vector<8xf32>
    %275 = vector.shape_cast %274 : vector<8xf32> to vector<8x1xf32>
    %276 = vector.broadcast %c11_i32 : i32 to vector<8x16xi32>
    %277 = arith.cmpi eq, %27, %276 : vector<8x16xi32>
    %278 = vector.shape_cast %275 : vector<8x1xf32> to vector<8x1xf32>
    %279 = vector.broadcast %278 : vector<8x1xf32> to vector<8x16xf32>
    %280 = arith.select %277, %279, %259 : vector<8x16xi1>, vector<8x16xf32>
    %c12_i32 = arith.constant 12 : i32
    %c0_58 = arith.constant 0 : index
    %281 = arith.index_cast %c12_i32 : i32 to index
    %282 = memref.load %arg2[%c0_58, %281] : memref<3x16xf32, #tpu.memory_space<smem>>
    %c1_59 = arith.constant 1 : index
    %283 = arith.index_cast %c12_i32 : i32 to index
    %284 = memref.load %arg2[%c1_59, %283] : memref<3x16xf32, #tpu.memory_space<smem>>
    %c2_60 = arith.constant 2 : index
    %285 = arith.index_cast %c12_i32 : i32 to index
    %286 = memref.load %arg2[%c2_60, %285] : memref<3x16xf32, #tpu.memory_space<smem>>
    %287 = vector.broadcast %284 : f32 to vector<8x128xf32>
    %288 = arith.mulf %0, %287 : vector<8x128xf32>
    %289 = vector.broadcast %282 : f32 to vector<8x128xf32>
    %290 = arith.mulf %21, %289 : vector<8x128xf32>
    %291 = arith.addf %288, %290 : vector<8x128xf32>
    %292 = vector.broadcast %286 : f32 to vector<8x128xf32>
    %293 = arith.mulf %26, %292 : vector<8x128xf32>
    %294 = arith.addf %291, %293 : vector<8x128xf32>
    %cst_61 = arith.constant dense<0xFF800000> : vector<8xf32>
    %295 = vector.multi_reduction <maximumf>, %294, %cst_61 [1] : vector<8x128xf32> to vector<8xf32>
    %296 = vector.shape_cast %295 : vector<8xf32> to vector<8x1xf32>
    %297 = vector.broadcast %c12_i32 : i32 to vector<8x16xi32>
    %298 = arith.cmpi eq, %27, %297 : vector<8x16xi32>
    %299 = vector.shape_cast %296 : vector<8x1xf32> to vector<8x1xf32>
    %300 = vector.broadcast %299 : vector<8x1xf32> to vector<8x16xf32>
    %301 = arith.select %298, %300, %280 : vector<8x16xi1>, vector<8x16xf32>
    %c13_i32 = arith.constant 13 : i32
    %c0_62 = arith.constant 0 : index
    %302 = arith.index_cast %c13_i32 : i32 to index
    %303 = memref.load %arg2[%c0_62, %302] : memref<3x16xf32, #tpu.memory_space<smem>>
    %c1_63 = arith.constant 1 : index
    %304 = arith.index_cast %c13_i32 : i32 to index
    %305 = memref.load %arg2[%c1_63, %304] : memref<3x16xf32, #tpu.memory_space<smem>>
    %c2_64 = arith.constant 2 : index
    %306 = arith.index_cast %c13_i32 : i32 to index
    %307 = memref.load %arg2[%c2_64, %306] : memref<3x16xf32, #tpu.memory_space<smem>>
    %308 = vector.broadcast %305 : f32 to vector<8x128xf32>
    %309 = arith.mulf %0, %308 : vector<8x128xf32>
    %310 = vector.broadcast %303 : f32 to vector<8x128xf32>
    %311 = arith.mulf %21, %310 : vector<8x128xf32>
    %312 = arith.addf %309, %311 : vector<8x128xf32>
    %313 = vector.broadcast %307 : f32 to vector<8x128xf32>
    %314 = arith.mulf %26, %313 : vector<8x128xf32>
    %315 = arith.addf %312, %314 : vector<8x128xf32>
    %cst_65 = arith.constant dense<0xFF800000> : vector<8xf32>
    %316 = vector.multi_reduction <maximumf>, %315, %cst_65 [1] : vector<8x128xf32> to vector<8xf32>
    %317 = vector.shape_cast %316 : vector<8xf32> to vector<8x1xf32>
    %318 = vector.broadcast %c13_i32 : i32 to vector<8x16xi32>
    %319 = arith.cmpi eq, %27, %318 : vector<8x16xi32>
    %320 = vector.shape_cast %317 : vector<8x1xf32> to vector<8x1xf32>
    %321 = vector.broadcast %320 : vector<8x1xf32> to vector<8x16xf32>
    %322 = arith.select %319, %321, %301 : vector<8x16xi1>, vector<8x16xf32>
    %c14_i32 = arith.constant 14 : i32
    %c0_66 = arith.constant 0 : index
    %323 = arith.index_cast %c14_i32 : i32 to index
    %324 = memref.load %arg2[%c0_66, %323] : memref<3x16xf32, #tpu.memory_space<smem>>
    %c1_67 = arith.constant 1 : index
    %325 = arith.index_cast %c14_i32 : i32 to index
    %326 = memref.load %arg2[%c1_67, %325] : memref<3x16xf32, #tpu.memory_space<smem>>
    %c2_68 = arith.constant 2 : index
    %327 = arith.index_cast %c14_i32 : i32 to index
    %328 = memref.load %arg2[%c2_68, %327] : memref<3x16xf32, #tpu.memory_space<smem>>
    %329 = vector.broadcast %326 : f32 to vector<8x128xf32>
    %330 = arith.mulf %0, %329 : vector<8x128xf32>
    %331 = vector.broadcast %324 : f32 to vector<8x128xf32>
    %332 = arith.mulf %21, %331 : vector<8x128xf32>
    %333 = arith.addf %330, %332 : vector<8x128xf32>
    %334 = vector.broadcast %328 : f32 to vector<8x128xf32>
    %335 = arith.mulf %26, %334 : vector<8x128xf32>
    %336 = arith.addf %333, %335 : vector<8x128xf32>
    %cst_69 = arith.constant dense<0xFF800000> : vector<8xf32>
    %337 = vector.multi_reduction <maximumf>, %336, %cst_69 [1] : vector<8x128xf32> to vector<8xf32>
    %338 = vector.shape_cast %337 : vector<8xf32> to vector<8x1xf32>
    %339 = vector.broadcast %c14_i32 : i32 to vector<8x16xi32>
    %340 = arith.cmpi eq, %27, %339 : vector<8x16xi32>
    %341 = vector.shape_cast %338 : vector<8x1xf32> to vector<8x1xf32>
    %342 = vector.broadcast %341 : vector<8x1xf32> to vector<8x16xf32>
    %343 = arith.select %340, %342, %322 : vector<8x16xi1>, vector<8x16xf32>
    %c15_i32 = arith.constant 15 : i32
    %c0_70 = arith.constant 0 : index
    %344 = arith.index_cast %c15_i32 : i32 to index
    %345 = memref.load %arg2[%c0_70, %344] : memref<3x16xf32, #tpu.memory_space<smem>>
    %c1_71 = arith.constant 1 : index
    %346 = arith.index_cast %c15_i32 : i32 to index
    %347 = memref.load %arg2[%c1_71, %346] : memref<3x16xf32, #tpu.memory_space<smem>>
    %c2_72 = arith.constant 2 : index
    %348 = arith.index_cast %c15_i32 : i32 to index
    %349 = memref.load %arg2[%c2_72, %348] : memref<3x16xf32, #tpu.memory_space<smem>>
    %350 = vector.broadcast %347 : f32 to vector<8x128xf32>
    %351 = arith.mulf %0, %350 : vector<8x128xf32>
    %352 = vector.broadcast %345 : f32 to vector<8x128xf32>
    %353 = arith.mulf %21, %352 : vector<8x128xf32>
    %354 = arith.addf %351, %353 : vector<8x128xf32>
    %355 = vector.broadcast %349 : f32 to vector<8x128xf32>
    %356 = arith.mulf %26, %355 : vector<8x128xf32>
    %357 = arith.addf %354, %356 : vector<8x128xf32>
    %cst_73 = arith.constant dense<0xFF800000> : vector<8xf32>
    %358 = vector.multi_reduction <maximumf>, %357, %cst_73 [1] : vector<8x128xf32> to vector<8xf32>
    %359 = vector.shape_cast %358 : vector<8xf32> to vector<8x1xf32>
    %360 = vector.broadcast %c15_i32 : i32 to vector<8x16xi32>
    %361 = arith.cmpi eq, %27, %360 : vector<8x16xi32>
    %362 = vector.shape_cast %359 : vector<8x1xf32> to vector<8x1xf32>
    %363 = vector.broadcast %362 : vector<8x1xf32> to vector<8x16xf32>
    %364 = arith.select %361, %363, %343 : vector<8x16xi1>, vector<8x16xf32>
    %c16_i32 = arith.constant 16 : i32
    %c0_74 = arith.constant 0 : index
    %c0_75 = arith.constant 0 : index
    %365 = vector.load %arg3[%c0_74, %c0_75] : memref<1x16xf32, #tpu.memory_space<vmem>>, vector<1x16xf32>
    %366 = vector.broadcast %365 : vector<1x16xf32> to vector<8x16xf32>
    %367 = arith.addf %364, %366 : vector<8x16xf32>
    %cst_76 = arith.constant 0.000000e+00 : f32
    %368 = vector.broadcast %cst_76 : f32 to vector<8x16xf32>
    %369 = arith.maximumf %367, %368 : vector<8x16xf32>
    %c0_77 = arith.constant 0 : index
    %c0_78 = arith.constant 0 : index
    %370 = vector.load %arg4[%c0_77, %c0_78] : memref<16x64xf32, #tpu.memory_space<vmem>>, vector<16x64xf32>
    %cst_79 = arith.constant dense<0.000000e+00> : vector<8x64xf32>
    %371 = tpu.matmul %369, %370, %cst_79 {dimension_numbers = #tpu.dot_dimension_numbers<[1], [0], [0], [1], [0, 0, 1, 1], [], []>} : vector<8x16xf32>, vector<16x64xf32>, vector<8x64xf32> -> vector<8x64xf32>
    %c0_80 = arith.constant 0 : index
    %c0_81 = arith.constant 0 : index
    %372 = vector.load %arg6[%c0_80, %c0_81] : memref<1x64xf32, #tpu.memory_space<vmem>>, vector<1x64xf32>
    %373 = vector.broadcast %372 : vector<1x64xf32> to vector<8x64xf32>
    %374 = arith.addf %371, %373 : vector<8x64xf32>
    %c0_82 = arith.constant 0 : index
    %c0_83 = arith.constant 0 : index
    %375 = vector.load %arg5[%c0_82, %c0_83] : memref<4x64xf32, #tpu.memory_space<vmem>>, vector<4x64xf32>
    %376 = vector.extract_strided_slice %375 {offsets = [0, 0], sizes = [1, 64], strides = [1, 1]} : vector<4x64xf32> to vector<1x64xf32>
    %377 = vector.broadcast %4 : vector<8x1xf32> to vector<8x64xf32>
    %378 = vector.broadcast %376 : vector<1x64xf32> to vector<8x64xf32>
    %379 = arith.mulf %377, %378 : vector<8x64xf32>
    %380 = arith.addf %374, %379 : vector<8x64xf32>
    %381 = vector.extract_strided_slice %375 {offsets = [1, 0], sizes = [1, 64], strides = [1, 1]} : vector<4x64xf32> to vector<1x64xf32>
    %382 = vector.broadcast %11 : vector<8x1xf32> to vector<8x64xf32>
    %383 = vector.broadcast %381 : vector<1x64xf32> to vector<8x64xf32>
    %384 = arith.mulf %382, %383 : vector<8x64xf32>
    %385 = arith.addf %380, %384 : vector<8x64xf32>
    %386 = vector.extract_strided_slice %375 {offsets = [2, 0], sizes = [1, 64], strides = [1, 1]} : vector<4x64xf32> to vector<1x64xf32>
    %387 = vector.broadcast %13 : vector<8x1xf32> to vector<8x64xf32>
    %388 = vector.broadcast %386 : vector<1x64xf32> to vector<8x64xf32>
    %389 = arith.mulf %387, %388 : vector<8x64xf32>
    %390 = arith.addf %385, %389 : vector<8x64xf32>
    %391 = vector.extract_strided_slice %375 {offsets = [3, 0], sizes = [1, 64], strides = [1, 1]} : vector<4x64xf32> to vector<1x64xf32>
    %392 = vector.broadcast %15 : vector<8x1xf32> to vector<8x64xf32>
    %393 = vector.broadcast %391 : vector<1x64xf32> to vector<8x64xf32>
    %394 = arith.mulf %392, %393 : vector<8x64xf32>
    %395 = arith.addf %390, %394 : vector<8x64xf32>
    %cst_84 = arith.constant 0.000000e+00 : f32
    %396 = vector.broadcast %cst_84 : f32 to vector<8x64xf32>
    %397 = arith.maximumf %395, %396 : vector<8x64xf32>
    %c0_85 = arith.constant 0 : index
    %c0_86 = arith.constant 0 : index
    %398 = vector.load %arg7[%c0_85, %c0_86] : memref<64x32xf32, #tpu.memory_space<vmem>>, vector<64x32xf32>
    %cst_87 = arith.constant dense<0.000000e+00> : vector<8x32xf32>
    %399 = tpu.matmul %397, %398, %cst_87 {dimension_numbers = #tpu.dot_dimension_numbers<[1], [0], [0], [1], [0, 0, 1, 1], [], []>} : vector<8x64xf32>, vector<64x32xf32>, vector<8x32xf32> -> vector<8x32xf32>
    %c0_88 = arith.constant 0 : index
    %c0_89 = arith.constant 0 : index
    %400 = vector.load %arg8[%c0_88, %c0_89] : memref<1x32xf32, #tpu.memory_space<vmem>>, vector<1x32xf32>
    %401 = vector.broadcast %400 : vector<1x32xf32> to vector<8x32xf32>
    %402 = arith.addf %399, %401 : vector<8x32xf32>
    %cst_90 = arith.constant 0.000000e+00 : f32
    %403 = vector.broadcast %cst_90 : f32 to vector<8x32xf32>
    %404 = arith.maximumf %402, %403 : vector<8x32xf32>
    %c0_91 = arith.constant 0 : index
    %c0_92 = arith.constant 0 : index
    %405 = vector.load %arg9[%c0_91, %c0_92] : memref<32x16xf32, #tpu.memory_space<vmem>>, vector<32x16xf32>
    %cst_93 = arith.constant dense<0.000000e+00> : vector<8x16xf32>
    %406 = tpu.matmul %404, %405, %cst_93 {dimension_numbers = #tpu.dot_dimension_numbers<[1], [0], [0], [1], [0, 0, 1, 1], [], []>} : vector<8x32xf32>, vector<32x16xf32>, vector<8x16xf32> -> vector<8x16xf32>
    %c0_94 = arith.constant 0 : index
    %c0_95 = arith.constant 0 : index
    %407 = vector.load %arg10[%c0_94, %c0_95] : memref<1x16xf32, #tpu.memory_space<vmem>>, vector<1x16xf32>
    %408 = vector.broadcast %407 : vector<1x16xf32> to vector<8x16xf32>
    %409 = arith.addf %406, %408 : vector<8x16xf32>
    %cst_96 = arith.constant 0.000000e+00 : f32
    %410 = vector.broadcast %cst_96 : f32 to vector<8x16xf32>
    %411 = arith.maximumf %409, %410 : vector<8x16xf32>
    %c0_97 = arith.constant 0 : index
    %c0_98 = arith.constant 0 : index
    %412 = vector.load %arg11[%c0_97, %c0_98] : memref<16x2xf32, #tpu.memory_space<vmem>>, vector<16x2xf32>
    %cst_99 = arith.constant dense<0.000000e+00> : vector<8x2xf32>
    %413 = tpu.matmul %411, %412, %cst_99 {dimension_numbers = #tpu.dot_dimension_numbers<[1], [0], [0], [1], [0, 0, 1, 1], [], []>} : vector<8x16xf32>, vector<16x2xf32>, vector<8x2xf32> -> vector<8x2xf32>
    %c0_100 = arith.constant 0 : index
    %c0_101 = arith.constant 0 : index
    %414 = vector.load %arg12[%c0_100, %c0_101] : memref<1x2xf32, #tpu.memory_space<vmem>>, vector<1x2xf32>
    %415 = vector.broadcast %414 : vector<1x2xf32> to vector<8x2xf32>
    %416 = arith.addf %413, %415 : vector<8x2xf32>
    %c0_102 = arith.constant 0 : index
    %c0_103 = arith.constant 0 : index
    %417 = vector.load %arg13[%c0_102, %c0_103] : memref<8x2xf32, #tpu.memory_space<vmem>>, vector<8x2xf32>
    tpu.vector_store %arg13[%c0_102, %c0_103], %416 {strides = array<i32>} : memref<8x2xf32, #tpu.memory_space<vmem>>, vector<8x2xf32>,
    return
  }
  func.func @transform_0(%arg0: i32) -> (i32, i32) {
    %c0_i32 = arith.constant 0 : i32
    %c0_i32_0 = arith.constant 0 : i32
    return %arg0, %c0_i32 : i32, i32
  }
  func.func @transform_1(%arg0: i32) -> (i32, i32) {
    %c0_i32 = arith.constant 0 : i32
    %c0_i32_0 = arith.constant 0 : i32
    %c0_i32_1 = arith.constant 0 : i32
    return %c0_i32, %c0_i32_0 : i32, i32
  }
  func.func @transform_2(%arg0: i32) -> (i32, i32) {
    %c0_i32 = arith.constant 0 : i32
    %c0_i32_0 = arith.constant 0 : i32
    %c0_i32_1 = arith.constant 0 : i32
    return %c0_i32, %c0_i32_0 : i32, i32
  }
  func.func @transform_3(%arg0: i32) -> (i32, i32) {
    %c0_i32 = arith.constant 0 : i32
    %c0_i32_0 = arith.constant 0 : i32
    %c0_i32_1 = arith.constant 0 : i32
    return %c0_i32, %c0_i32_0 : i32, i32
  }
  func.func @transform_4(%arg0: i32) -> (i32, i32) {
    %c0_i32 = arith.constant 0 : i32
    %c0_i32_0 = arith.constant 0 : i32
    %c0_i32_1 = arith.constant 0 : i32
    return %c0_i32, %c0_i32_0 : i32, i32
  }
  func.func @transform_5(%arg0: i32) -> (i32, i32) {
    %c0_i32 = arith.constant 0 : i32
    %c0_i32_0 = arith.constant 0 : i32
    %c0_i32_1 = arith.constant 0 : i32
    return %c0_i32, %c0_i32_0 : i32, i32
  }
  func.func @transform_6(%arg0: i32) -> (i32, i32) {
    %c0_i32 = arith.constant 0 : i32
    %c0_i32_0 = arith.constant 0 : i32
    %c0_i32_1 = arith.constant 0 : i32
    return %c0_i32, %c0_i32_0 : i32, i32
  }
  func.func @transform_7(%arg0: i32) -> (i32, i32) {
    %c0_i32 = arith.constant 0 : i32
    %c0_i32_0 = arith.constant 0 : i32
    %c0_i32_1 = arith.constant 0 : i32
    return %c0_i32, %c0_i32_0 : i32, i32
  }
  func.func @transform_8(%arg0: i32) -> (i32, i32) {
    %c0_i32 = arith.constant 0 : i32
    %c0_i32_0 = arith.constant 0 : i32
    %c0_i32_1 = arith.constant 0 : i32
    return %c0_i32, %c0_i32_0 : i32, i32
  }
  func.func @transform_9(%arg0: i32) -> (i32, i32) {
    %c0_i32 = arith.constant 0 : i32
    %c0_i32_0 = arith.constant 0 : i32
    %c0_i32_1 = arith.constant 0 : i32
    return %c0_i32, %c0_i32_0 : i32, i32
  }
  func.func @transform_10(%arg0: i32) -> (i32, i32) {
    %c0_i32 = arith.constant 0 : i32
    %c0_i32_0 = arith.constant 0 : i32
    %c0_i32_1 = arith.constant 0 : i32
    return %c0_i32, %c0_i32_0 : i32, i32
  }
  func.func @transform_11(%arg0: i32) -> (i32, i32) {
    %c0_i32 = arith.constant 0 : i32
    %c0_i32_0 = arith.constant 0 : i32
    %c0_i32_1 = arith.constant 0 : i32
    return %c0_i32, %c0_i32_0 : i32, i32
  }
  func.func @transform_12(%arg0: i32) -> (i32, i32) {
    %c0_i32 = arith.constant 0 : i32
    %c0_i32_0 = arith.constant 0 : i32
    return %arg0, %c0_i32 : i32, i32
  }
}

</mosaic_0001>

<bundles_post_ra>
// kernel: fault_prediction_forward.1
= control target key start
LH: loop header
LB: loop body
LE: loop exit
PB: predicated region body
PF: predicated region fallthrough
CT: control target
= control target key end

     0   :  { %17 = vsyncpa [#allocation3], 0  ;;  %s1219_s0 = inlined_call_operand.vmem [shape: f32[8,128], index: 0, kind: input, shape index: {}]   ;;  %s1220_s1 = inlined_call_operand.vmem [shape: f32[3,16], index: 1, kind: input, shape index: {}]   ;;  %s1221_s2 = inlined_call_operand.vmem [shape: f32[1,16], index: 2, kind: input, shape index: {}]   ;;  %s1222_s3 = inlined_call_operand.vmem [shape: f32[16,64], index: 3, kind: input, shape index: {}]   ;;  %s1223_s4 = inlined_call_operand.vmem [shape: f32[4,64], index: 4, kind: input, shape index: {}]   ;;  %s1224_s5 = inlined_call_operand.vmem [shape: f32[1,64], index: 5, kind: input, shape index: {}]   ;;  %s1225_s6 = inlined_call_operand.vmem [shape: f32[64,32], index: 6, kind: input, shape index: {}]   ;;  %s1226_s7 = inlined_call_operand.vmem [shape: f32[1,32], index: 7, kind: input, shape index: {}]   ;;  %s1227_s8 = inlined_call_operand.vmem [shape: f32[32,16], index: 8, kind: input, shape index: {}]   ;;  %s1228_s9 = inlined_call_operand.vmem [shape: f32[1,16], index: 9, kind: input, shape index: {}]   ;;  %s1229_s10 = inlined_call_operand.vmem [shape: f32[16,2], index: 10, kind: input, shape index: {}]   ;;  %s1230_s11 = inlined_call_operand.vmem [shape: f32[1,2], index: 11, kind: input, shape index: {}]   ;;  %s1231_s12 = inlined_call_operand.vmem [shape: f32[8,2], index: 12, kind: output, shape index: {}]  }
   0x1   :  { %s26_s23 = sshll.u32 %s1220_s1, 4  ;;  %s27_s23 = int_to_ptr.vmem [resolvable:$true] %s26_s23 }
   0x2   :  { %s824_s24 = scalar_lea.vmem %s27_s23, 64  ;;  %p829_p1 = scmp.lt.s32.totalorder %s27_s23, %s27_s23 }
   0x3   :  { %p825_p0 = scmp.ne.s32.totalorder %s27_s23, %s824_s24  ;;  %p830_p2 = scmp.lt.s32.totalorder %s824_s24, %s824_s24 }
   0x5   :  { %p831_p3 = por %p830_p2, %p829_p1 }
   0x7   :  { %p832_p4 = pnand %p831_p3, %p825_p0 }
   0x9   :  { %835 = shalt.err (!%p832_p4)
}
   0xa   :  { %s838_s25 = smov [#allocation2]  }
   0xb   :  { %29 = dma.vmem_to_smem %s27_s23, 64, %s838_s25, [#allocation3]  }
   0xc   :  { %836 = dma.done.wait [#allocation3], 64  }
   0xd   :  { %837 = vsyncadd [#allocation3], 4294967232 }
   0xe   :  { %53 = sfence }
   0xf   :  { %v914_v0 = vld [vmem:[%s1219_s0] sm:$0xff]  ;;  %s839_s28 = smov 1   ;;  %s840_s1 = smov 127   ;;  %v67_v1 = vlaneseq  ;;  %vm842_vm2 = vmmov 0  }
  0x10   :  { %70 = vrot.lane.b32.xlu0 %v914_v0, %s839_s28  ;;  %s918_s29 = sld [smem:[#allocation2 + $0x2]] }
  0x11   :  { %s705_s30 = sld [smem:[#allocation2 + $0x82]]  ;;  %v939_v2 = vand.u32 127, %v67_v1 }
  0x12   :  { %s920_s13 = sld [smem:[#allocation2 + $0x102]] }
  0x13   :  { %s922_s14 = sld [smem:[#allocation2]]  ;;  %vm69_vm0 = vcmp.eq.s32.totalorder %v939_v2, 0  ;;  %vm73_vm1 = vcmp.eq.s32.totalorder %v939_v2, 127  ;;  %vm104_vm3 = vcmp.eq.s32.totalorder %v939_v2, 1  ;;  %vm119_vm4 = vcmp.eq.s32.totalorder %v939_v2, 2 }
  0x14   :  { %74 = vrot.lane.b32.xlu0 %v914_v0, %s840_s1  ;;  %s699_s15 = sld [smem:[#allocation2 + $0x80]]  ;;  %vm134_vm5 = vcmp.eq.s32.totalorder %v939_v2, 3  ;;  %vm149_vm6 = vcmp.eq.s32.totalorder %v939_v2, 4  ;;  %vm164_vm7 = vcmp.eq.s32.totalorder %v939_v2, 5  ;;  %vm179_vm8 = vcmp.eq.s32.totalorder %v939_v2, 6 }
  0x15   :  { %s924_s16 = sld [smem:[#allocation2 + $0x100]]  ;;  %vm194_vm9 = vcmp.eq.s32.totalorder %v939_v2, 7  ;;  %vm209_vm10 = vcmp.eq.s32.totalorder %v939_v2, 8  ;;  %vm224_vm11 = vcmp.eq.s32.totalorder %v939_v2, 9  ;;  %vm239_vm12 = vcmp.eq.s32.totalorder %v939_v2, 10 }
  0x16   :  { %s926_s17 = sld [smem:[#allocation2 + $0xb]]  ;;  %v111_v5 = vstv %s918_s29  ;;  %vm254_vm13 = vcmp.eq.s32.totalorder %v939_v2, 11  ;;  %vm269_vm14 = vcmp.eq.s32.totalorder %v939_v2, 12  ;;  %vm284_vm15 = vcmp.eq.s32.totalorder %v939_v2, 13 }
  0x17   :  { %s928_s0 = sld [smem:[#allocation2 + $0x8b]]  ;;  %v109_v3 = vstv %s705_s30 }
  0x18   :  { %s930_s18 = sld [smem:[#allocation2 + $0x10b]]  ;;  %v110_v10 = vmul.f32 %v109_v3, %v914_v0  ;;  %v114_v17 = vstv %s920_s13 }
  0x19   :  { %s932_s19 = sld [smem:[#allocation2 + $0x1]]  ;;  %v82_v6 = vstv %s922_s14 }
  0x1a   :  { %s934_s20 = sld [smem:[#allocation2 + $0x81]]  ;;  %v80_v4 = vstv %s699_s15 }
  0x1b   :  { %s936_s21 = sld [smem:[#allocation2 + $0x101]]  ;;  %v81_v11 = vmul.f32 %v80_v4, %v914_v0  ;;  %v85_v18 = vstv %s924_s16 }
  0x1c   :  { %s941_s22 = sld [smem:[#allocation2 + $0xd]]  ;;  %v246_v15 = vstv %s926_s17 }
  0x1d   :  { %s943_s23 = sld [smem:[#allocation2 + $0x8d]]  ;;  %v244_v8 = vstv %s928_s0 }
  0x1e   :  { %s945_s24 = sld [smem:[#allocation2 + $0x10d]]  ;;  %v245_v19 = vmul.f32 %v244_v8, %v914_v0  ;;  %v249_v20 = vstv %s930_s18 }
  0x1f   :  { %s947_s25 = sld [smem:[#allocation2 + $0x83]]  ;;  %v96_v16 = vstv %s932_s19 }
  0x20   :  { %s950_s26 = sld [smem:[#allocation2 + $0x3]]  ;;  %v94_v12 = vstv %s934_s20 }
  0x21   :  { %s954_s27 = sld [smem:[#allocation2 + $0x8f]]  ;;  %v95_v22 = vmul.f32 %v94_v12, %v914_v0  ;;  %v99_v23 = vstv %s936_s21 }
  0x22   :  { %s958_s28 = sld [smem:[#allocation2 + $0x103]]  ;;  %v276_v25 = vstv %s941_s22 }
  0x23   :  { %s967_s1 = sld [smem:[#allocation2 + $0xf]]  ;;  %v274_v24 = vstv %s943_s23 }
  0x24   :  { %s973_s29 = sld [smem:[#allocation2 + $0x84]]  ;;  %v275_v34 = vmul.f32 %v274_v24, %v914_v0  ;;  %v279_v35 = vstv %s945_s24 }
  0x25   :  { %s979_s30 = sld [smem:[#allocation2 + $0x4]]  ;;  %v124_v29 = vstv %s947_s25 }
  0x26   :  { %s985_s14 = sld [smem:[#allocation2 + $0x10f]]  ;;  %v126_v36 = vstv %s950_s26  ;;  %v125_v43 = vmul.f32 %v124_v29, %v914_v0 }
  0x27   :  { %s994_s13 = sld [smem:[#allocation2 + $0x104]]  ;;  %v304_v37 = vstv %s954_s27 }
  0x28   :  { %s998_s15 = sld [smem:[#allocation2 + $0x85]]  ;;  %v129_v44 = vstv %s958_s28  ;;  %v305_v50 = vmul.f32 %v304_v37, %v914_v0 }
  0x29   :  { %s1004_s16 = sld [smem:[#allocation2 + $0x5]]  ;;  %v306_v45 = vstv %s967_s1 }
  0x2a   :  { %s1012_s17 = sld [smem:[#allocation2 + $0x105]]  ;;  %v139_v49 = vstv %s973_s29 }
  0x2b   :  { %s1016_s0 = sld [smem:[#allocation2 + $0x6]]  ;;  %v141_v51 = vstv %s979_s30  ;;  %v140_v58 = vmul.f32 %v139_v49, %v914_v0 }
  0x2c   :  { %s1020_s18 = sld [smem:[#allocation2 + $0x86]]  ;;  %v309_v57 = vstv %s985_s14 }
  0x2d   :  { %v144_v59 = vstv %s994_s13  ;;  %s1028_s19 = sld [smem:[#allocation2 + $0x106]] }
  0x2e   :  { %v154_v63 = vstv %s998_s15  ;;  %s1032_s20 = sld [smem:[#allocation2 + $0x7]] }
  0x2f   :  { %v156_v3 = vstv %s1004_s16  ;;  %s1035_s21 = sld [smem:[#allocation2 + $0x87]]  ;;  %v155_v8 = vmul.f32 %v154_v63, %v914_v0 }
  0x30   :  { %s1041_s22 = sld [smem:[#allocation2 + $0x107]] }
  0x31   :  { %s1044_s23 = sld [smem:[#allocation2 + $0x8]] }
  0x32   :  { %s1048_s24 = sld [smem:[#allocation2 + $0x88]] }
  0x33   :  { %s1052_s25 = sld [smem:[#allocation2 + $0x108]] }
  0x34   :  { %s1056_s26 = sld [smem:[#allocation2 + $0x9]]  ;;  %v186_v24 = vstv %s1032_s20 }
  0x35   :  { %s1060_s27 = sld [smem:[#allocation2 + $0x89]] }
  0x36   :  { %s1064_s28 = sld [smem:[#allocation2 + $0x109]] }
  0x37   :  { %s1068_s1 = sld [smem:[#allocation2 + $0xa]] }
  0x38   :  { %s1072_s29 = sld [smem:[#allocation2 + $0x8a]] }
  0x39   :  { %s1076_s30 = sld [smem:[#allocation2 + $0x10a]] }
  0x3a   :  { %s1080_s14 = sld [smem:[#allocation2 + $0xc]] }
  0x3b   :  { %s735_s13 = sld [smem:[#allocation2 + $0x8c]] }
  0x3c   :  { %s736_s15 = sld [smem:[#allocation2 + $0x10c]] }
  0x3d   :  { %s740_s16 = sld [smem:[#allocation2 + $0xe]]  ;;  %v231_v49 = vstv %s1068_s1 }
  0x82   :  { %v71_v7 = vpop.permute.xlu0 %70 }
  0x83   :  { %v962_v9 = vsel %vm69_vm0, 0.0, %v71_v7 }
  0x84   :  { %v112_v13 = vmul.f32 %v111_v5, %v962_v9  ;;  %v83_v14 = vmul.f32 %v82_v6, %v962_v9  ;;  %v247_v27 = vmul.f32 %v246_v15, %v962_v9  ;;  %v97_v28 = vmul.f32 %v96_v16, %v962_v9 }
  0x85   :  { %v277_v42 = vmul.f32 %v276_v25, %v962_v9  ;;  %v127_v48 = vmul.f32 %v126_v36, %v962_v9  ;;  %v307_v56 = vmul.f32 %v306_v45, %v962_v9  ;;  %v142_v62 = vmul.f32 %v141_v51, %v962_v9 }
  0x86   :  { %v75_v21 = vpop.permute.xlu0 %74  ;;  %v113_v30 = vadd.f32 %v112_v13, %v110_v10  ;;  %v84_v32 = vadd.f32 %v83_v14, %v81_v11  ;;  %v248_v46 = vadd.f32 %v247_v27, %v245_v19  ;;  %v98_v47 = vadd.f32 %v97_v28, %v95_v22 }
  0x87   :  { %v989_v26 = vsel %vm73_vm1, 0.0, %v75_v21  ;;  %v278_v60 = vadd.f32 %v277_v42, %v275_v34  ;;  %v128_v61 = vadd.f32 %v127_v48, %v125_v43  ;;  %v159_v10 = vstv %s1012_s17  ;;  %s741_s17 = sld [smem:[#allocation2 + $0x8e]] }
  0x88   :  { %v115_v31 = vmul.f32 %v114_v17, %v989_v26  ;;  %v86_v33 = vmul.f32 %v85_v18, %v989_v26  ;;  %v250_v40 = vmul.f32 %v249_v20, %v989_v26  ;;  %v100_v41 = vmul.f32 %v99_v23, %v989_v26 }
  0x89   :  { %v280_v54 = vmul.f32 %v279_v35, %v989_v26  ;;  %v130_v55 = vmul.f32 %v129_v44, %v989_v26  ;;  %v310_v6 = vmul.f32 %v309_v57, %v989_v26  ;;  %v145_v7 = vmul.f32 %v144_v59, %v989_v26 }
  0x8a   :  { %v116_v38 = vadd.f32 %v115_v31, %v113_v30  ;;  %v87_v39 = vadd.f32 %v86_v33, %v84_v32  ;;  %v251_v52 = vadd.f32 %v250_v40, %v248_v46  ;;  %v101_v53 = vadd.f32 %v100_v41, %v98_v47 }
  0x8b   :  { %v281_v4 = vadd.f32 %v280_v54, %v278_v60  ;;  %v131_v5 = vadd.f32 %v130_v55, %v128_v61  ;;  %v308_v11 = vadd.f32 %v307_v56, %v305_v50  ;;  %v143_v12 = vadd.f32 %v142_v62, %v140_v58 }
  0x8c   :  { %117 = vmax.xlane.f32.xlu0 %v116_v38  ;;  %88 = vmax.xlane.f32.xlu1 %v87_v39  ;;  %v157_v13 = vmul.f32 %v156_v3, %v962_v9  ;;  %v169_v14 = vstv %s1020_s18  ;;  %v171_v15 = vstv %s1016_s0  ;;  %v160_v18 = vmul.f32 %v159_v10, %v989_v26  ;;  %s742_s0 = sld [smem:[#allocation2 + $0x10e]] }
  0x8d   :  { %v311_v16 = vadd.f32 %v310_v6, %v308_v11  ;;  %v146_v17 = vadd.f32 %v145_v7, %v143_v12  ;;  %v174_v19 = vstv %s1028_s19  ;;  %v170_v21 = vmul.f32 %v169_v14, %v914_v0 }
  0x8e   :  { %v158_v20 = vadd.f32 %v157_v13, %v155_v8  ;;  %v172_v22 = vmul.f32 %v171_v15, %v962_v9  ;;  %v184_v23 = vstv %s1035_s21  ;;  %v175_v27 = vmul.f32 %v174_v19, %v989_v26 }
  0x8f   :  { %v189_v28 = vstv %s1041_s22  ;;  %v185_v30 = vmul.f32 %v184_v23, %v914_v0  ;;  %v187_v31 = vmul.f32 %v186_v24, %v962_v9  ;;  %v199_v32 = vstv %s1048_s24 }
  0x90   :  { %252 = vmax.xlane.f32.xlu0 %v251_v52  ;;  %102 = vmax.xlane.f32.xlu1 %v101_v53  ;;  %v161_v25 = vadd.f32 %v160_v18, %v158_v20  ;;  %v173_v29 = vadd.f32 %v172_v22, %v170_v21  ;;  %v201_v33 = vstv %s1044_s23  ;;  %v190_v35 = vmul.f32 %v189_v28, %v989_v26 }
  0x91   :  { %v204_v36 = vstv %s1052_s25  ;;  %v188_v37 = vadd.f32 %v187_v31, %v185_v30  ;;  %v200_v38 = vmul.f32 %v199_v32, %v914_v0  ;;  %v202_v39 = vmul.f32 %v201_v33, %v962_v9 }
  0x92   :  { %v176_v34 = vadd.f32 %v175_v27, %v173_v29  ;;  %v214_v40 = vstv %s1060_s27  ;;  %v216_v41 = vstv %s1056_s26  ;;  %v205_v43 = vmul.f32 %v204_v36, %v989_v26 }
  0x93   :  { %v191_v42 = vadd.f32 %v190_v35, %v188_v37  ;;  %v219_v44 = vstv %s1064_s28  ;;  %v203_v45 = vadd.f32 %v202_v39, %v200_v38  ;;  %v215_v46 = vmul.f32 %v214_v40, %v914_v0 }
  0x94   :  { %282 = vmax.xlane.f32.xlu0 %v281_v4  ;;  %132 = vmax.xlane.f32.xlu1 %v131_v5  ;;  %v217_v47 = vmul.f32 %v216_v41, %v962_v9  ;;  %v229_v48 = vstv %s1072_s29  ;;  %v220_v51 = vmul.f32 %v219_v44, %v989_v26  ;;  %v234_v52 = vstv %s1076_s30 }
  0x95   :  { %v206_v50 = vadd.f32 %v205_v43, %v203_v45  ;;  %v230_v54 = vmul.f32 %v229_v48, %v914_v0  ;;  %v232_v55 = vmul.f32 %v231_v49, %v962_v9  ;;  %v259_v56 = vstv %s735_s13 }
  0x96   :  { %v218_v53 = vadd.f32 %v217_v47, %v215_v46  ;;  %v261_v57 = vstv %s1080_s14  ;;  %v235_v59 = vmul.f32 %v234_v52, %v989_v26  ;;  %v264_v60 = vstv %s736_s15  ;;  %v746_v47 = vld [vmem:[%s1221_s2] ss:$0 sm:$0xff] }
  0x97   :  { %v233_v61 = vadd.f32 %v232_v55, %v230_v54  ;;  %v260_v62 = vmul.f32 %v259_v56, %v914_v0  ;;  %v262_v63 = vmul.f32 %v261_v57, %v962_v9  ;;  %v289_v3 = vstv %s741_s17  ;;  %v440_v57 = vld [vmem:[%s1225_s6 + $0x30] sm:$0xff] }
  0x98   :  { %312 = vmax.xlane.f32.xlu0 %v311_v16  ;;  %147 = vmax.xlane.f32.xlu1 %v146_v17  ;;  %v221_v58 = vadd.f32 %v220_v51, %v218_v53  ;;  %v291_v4 = vstv %s740_s16  ;;  %v265_v6 = vmul.f32 %v264_v60, %v989_v26  ;;  %v294_v7 = vstv %s742_s0  ;;  %v326_v16 = vld [vmem:[%s1222_s3 + $0x8] sm:$0xff]  ;;  %v436_v60 = vld [vmem:[%s1225_s6 + $0x10] sm:$0xff] }
  0x99   :  { %v236_v5 = vadd.f32 %v235_v59, %v233_v61  ;;  %v263_v8 = vadd.f32 %v262_v63, %v260_v62  ;;  %v290_v10 = vmul.f32 %v289_v3, %v914_v0  ;;  %v292_v11 = vmul.f32 %v291_v4, %v962_v9  ;;  %v325_v9 = vld [vmem:[%s1222_s3] sm:$0xff]  ;;  %v435_v61 = vld [vmem:[%s1225_s6 + $0x8] sm:$0xff]  ;;  %v527_v63 = vld [vmem:[%s1227_s8 + $0x18] sm:$0xff] }
  0x9a   :  { %v295_v13 = vmul.f32 %v294_v7, %v989_v26  ;;  %v841_v17 = vmov 0.0   ;;  %v441_v26 = vld [vmem:[%s1225_s6 + $0x38] sm:$0xff]  ;;  %vm314_vm1 = vcmp.eq.s32.totalorder %v939_v2, 15  ;;  %v438_v59 = vld [vmem:[%s1225_s6 + $0x20] sm:$0xff]  ;;  %v410_v3 = vshrl.u32 %v67_v1, 7 }
  0x9b   :  { %v266_v12 = vadd.f32 %v265_v6, %v263_v8  ;;  %v293_v14 = vadd.f32 %v292_v11, %v290_v10  ;;  %775 = vmatprep.subr.mxu0 %v841_v17  ;;  %779 = vmatprep.mubr.msk.f32.mxu0 %vm842_vm2, %v841_v17  ;;  %v434_v62 = vld [vmem:[%s1225_s6] sm:$0xff] }
  0x9c   :  { %162 = vmax.xlane.f32.xlu1 %v161_v25  ;;  %776 = vmatpush3.msra.mxu0 %v326_v16  ;;  %v411_v4 = vsub.s32 0, %v410_v3  ;;  %v408_v6 = vld [vmem:[%s1223_s4] sm:$0xf]  ;;  %v423_v8 = vsub.s32 2, %v410_v3 }
  0x9d   :  { %v296_v15 = vadd.f32 %v295_v13, %v293_v14  ;;  %782 = vmatprep.subr.mxu1 %v841_v17  ;;  %777 = vmatprep.subr.mxu0 %v841_v17  ;;  %v429_v13 = vsub.s32 3, %v410_v3  ;;  %v747_v14 = vld [vmem:[%s1224_s5] ss:$0 sm:$0xff] }
  0x9e   :  { %798 = vmatprep.mubr.msk.f32.mxu1 %vm842_vm2, %v841_v17  ;;  %778 = vmatpush3.msra.mxu0 %v325_v9  ;;  %v412_v10 = vrot.slane %v408_v6, %v411_v4 }
  0x9f   :  { %801 = vmatprep.subr.mxu0 %v841_v17  ;;  %783 = vmatpush3.msra.mxu1 %v441_v26 }
  0xa0   :  { %177 = vmax.xlane.f32.xlu1 %v176_v34  ;;  %784 = vmatprep.subr.mxu1 %v841_v17 }
  0xa1   :  { %785 = vmatpush3.msra.mxu1 %v440_v57 }
  0xa2   :  { %786 = vmatprep.subr.mxu1 %v841_v17 }
  0xa4   :  { %192 = vmax.xlane.f32.xlu1 %v191_v42 }
  0xa8   :  { %207 = vmax.xlane.f32.xlu1 %v206_v50 }
  0xac   :  { %222 = vmax.xlane.f32.xlu1 %v221_v58  ;;  %v439_v58 = vld [vmem:[%s1225_s6 + $0x28] sm:$0xff] }
  0xad   :  { %787 = vmatpush3.msra.mxu1 %v439_v58 }
  0xae   :  { %788 = vmatprep.subr.mxu1 %v841_v17 }
  0xaf   :  { %789 = vmatpush3.msra.mxu1 %v438_v59 }
  0xb0   :  { %237 = vmax.xlane.f32.xlu1 %v236_v5  ;;  %790 = vmatprep.subr.mxu1 %v841_v17  ;;  %v417_v5 = vsub.s32 1, %v410_v3 }
  0xb2   :  { %v418_v11 = vrot.slane %v408_v6, %v417_v5 }
  0xb4   :  { %267 = vmax.xlane.f32.xlu1 %v266_v12 }
  0xb8   :  { %297 = vmax.xlane.f32.xlu1 %v296_v15  ;;  %v424_v15 = vrot.slane %v408_v6, %v423_v8 }
  0xbc   :  { %55 = vadd.xlane.f32.xlu1 %v914_v0 }
  0xc0   :  { %63 = vmax.xlane.f32.xlu1 %v914_v0 }
 0x115   :  { %v89_v18 = vpop.xlane.xlu1 %88  ;;  %v118_v28 = vpop.xlane.xlu0 %117 }
 0x116   :  { %v90_v25 = vsel %vm69_vm0, %v89_v18, 0.0  ;;  %vm299_vm0 = vcmp.eq.s32.totalorder %v939_v2, 14 }
 0x119   :  { %v103_v19 = vpop.xlane.xlu1 %102  ;;  %v253_v35 = vpop.xlane.xlu0 %252 }
 0x11a   :  { %v105_v27 = vsel %vm104_vm3, %v103_v19, %v90_v25  ;;  %vm334_vm3 = vcmask 130048   ;;  %v430_v19 = vrot.slane %v408_v6, %v429_v13 }
 0x11b   :  { %v120_v30 = vsel %vm119_vm4, %v118_v28, %v105_v27  ;;  %vm449_vm4 = vcmask 523264  }
 0x11d   :  { %v133_v20 = vpop.xlane.xlu1 %132  ;;  %v283_v42 = vpop.xlane.xlu0 %282 }
 0x11e   :  { %v135_v31 = vsel %vm134_vm5, %v133_v20, %v120_v30  ;;  %v526_v30 = vld [vmem:[%s1227_s8 + $0x10] sm:$0xff]  ;;  %vm535_vm5 = vcmask 261120  }
 0x121   :  { %v148_v21 = vpop.xlane.xlu1 %147  ;;  %v313_v49 = vpop.xlane.xlu0 %312 }
 0x122   :  { %v150_v32 = vsel %vm149_vm6, %v148_v21, %v135_v31  ;;  %v525_v31 = vld [vmem:[%s1227_s8 + $0x8] sm:$0xff] }
 0x125   :  { %v163_v22 = vpop.xlane.xlu1 %162 }
 0x126   :  { %v165_v33 = vsel %vm164_vm7, %v163_v22, %v150_v32  ;;  %v524_v32 = vld [vmem:[%s1227_s8] sm:$0xff] }
 0x129   :  { %v178_v23 = vpop.xlane.xlu1 %177 }
 0x12a   :  { %v180_v36 = vsel %vm179_vm8, %v178_v23, %v165_v33  ;;  %v749_v33 = vld [vmem:[%s1226_s7] ss:$0 sm:$0xff] }
 0x12d   :  { %v193_v24 = vpop.xlane.xlu1 %192 }
 0x12e   :  { %v195_v37 = vsel %vm194_vm9, %v193_v24, %v180_v36 }
 0x131   :  { %v208_v29 = vpop.xlane.xlu1 %207 }
 0x132   :  { %v210_v38 = vsel %vm209_vm10, %v208_v29, %v195_v37 }
 0x135   :  { %v223_v34 = vpop.xlane.xlu1 %222 }
 0x136   :  { %v225_v39 = vsel %vm224_vm11, %v223_v34, %v210_v38  ;;  %v611_v38 = vld [vmem:[%s1229_s10 + $0x8] sm:$0xff] }
 0x139   :  { %v238_v40 = vpop.xlane.xlu1 %237 }
 0x13a   :  { %v240_v41 = vsel %vm239_vm12, %v238_v40, %v225_v39  ;;  %v610_v39 = vld [vmem:[%s1229_s10] sm:$0xff] }
 0x13b   :  { %v255_v43 = vsel %vm254_vm13, %v253_v35, %v240_v41  ;;  %v751_v40 = vld [vmem:[%s1228_s9] ss:$0 sm:$0xff] }
 0x13d   :  { %v268_v44 = vpop.xlane.xlu1 %267 }
 0x13e   :  { %v270_v45 = vsel %vm269_vm14, %v268_v44, %v255_v43 }
 0x13f   :  { %v285_v46 = vsel %vm284_vm15, %v283_v42, %v270_v45  ;;  %v753_v45 = vld [vmem:[%s1230_s11] ss:$0 sm:$0xff] }
 0x141   :  { %v298_v48 = vpop.xlane.xlu1 %297 }
 0x142   :  { %v300_v50 = vsel %vm299_vm0, %v298_v48, %v285_v46 }
 0x143   :  { %v315_v51 = vsel %vm314_vm1, %v313_v49, %v300_v50 }
 0x144   :  { %v323_v52 = vadd.f32 %v746_v47, %v315_v51 }
 0x145   :  { %v56_v53 = vpop.xlane.xlu1 %55 }
 0x146   :  { %v324_v54 = vmax.f32 %v323_v52, 0.0  ;;  %v57_v55 = vmul.f32 0.0078125, %v56_v53 }
 0x148   :  { %780 = vmatmul.mubr.msk.f32.vlgmr.msra.gmra.mxu0 %vm334_vm3, %v324_v54  ;;  %v58_v56 = vsub.f32 %v914_v0, %v57_v55  ;;  %v413_v1 = vmul.f32 %v412_v10, %v57_v55 }
 0x149   :  { %809 = vmatprep.mubr.msk.f32.mxu0 %vm842_vm2, %v841_v17  ;;  %802 = vmatpush3.msra.mxu0 %v527_v63  ;;  %v64_v9 = vpop.xlane.xlu1 %63 }
 0x14a   :  { %v59_v2 = vmul.f32 %v58_v56, %v58_v56  ;;  %803 = vmatprep.subr.mxu0 %v841_v17  ;;  %v425_v23 = vmul.f32 %v424_v15, %v64_v9 }
 0x14b   :  { %804 = vmatpush3.msra.mxu0 %v526_v30 }
 0x14c   :  { %60 = vadd.xlane.f32.xlu0 %v59_v2  ;;  %805 = vmatprep.subr.mxu0 %v841_v17 }
 0x14d   :  { %806 = vmatpush3.msra.mxu0 %v525_v31 }
 0x14e   :  { %807 = vmatprep.subr.mxu0 %v841_v17 }
 0x14f   :  { %808 = vmatpush3.msra.mxu0 %v524_v32 }
 0x150   :  { %65 = vmin.xlane.f32.xlu0 %v914_v0  ;;  %v437_v0 = vld [vmem:[%s1225_s6 + $0x18] sm:$0xff]  ;;  %812 = vmatprep.subr.mxu0 %v841_v17 }
 0x151   :  { %791 = vmatpush3.msra.mxu1 %v437_v0 }
 0x152   :  { %792 = vmatprep.subr.mxu1 %v841_v17 }
 0x153   :  { %793 = vmatpush3.msra.mxu1 %v436_v60 }
 0x154   :  { %794 = vmatprep.subr.mxu1 %v841_v17 }
 0x155   :  { %795 = vmatpush3.msra.mxu1 %v435_v61 }
 0x156   :  { %796 = vmatprep.subr.mxu1 %v841_v17 }
 0x157   :  { %797 = vmatpush3.msra.mxu1 %v434_v62 }
 0x1d5   :  { %v61_v7 = vpop.xlane.xlu0 %60 }
 0x1d6   :  { %v62_v12 = vmul.f32 0.0078125, %v61_v7 }
 0x1d8   :  { %v419_v18 = vmul.f32 %v418_v11, %v62_v12 }
 0x1d9   :  { %v66_v21 = vpop.xlane.xlu0 %65 }
 0x1da   :  { %v431_v25 = vmul.f32 %v430_v19, %v66_v21 }
 0x208   :  { %v404_v16 = vpop.f32.mrf.mxu0 }
 0x209   :  { %v405_v26 = vadd.f32 %v747_v14, %v404_v16 }
 0x20a   :  { %v781_v20 = vpop.f32.mrf.mxu0 }
 0x20b   :  { %v414_v22 = vadd.f32 %v413_v1, %v405_v26 }
 0x20d   :  { %v420_v24 = vadd.f32 %v419_v18, %v414_v22 }
 0x20f   :  { %v426_v27 = vadd.f32 %v425_v23, %v420_v24 }
 0x211   :  { %v432_v28 = vadd.f32 %v431_v25, %v426_v27 }
 0x213   :  { %v433_v29 = vmax.f32 %v432_v28, 0.0 }
 0x215   :  { %799 = vmatmul.mubr.msk.f32.vlgmr.msra.gmra.mxu1 %vm449_vm4, %v433_v29 }
 0x2d5   :  { %v519_v34 = vpop.f32.mrf.mxu1 }
 0x2d6   :  { %v520_v35 = vadd.f32 %v749_v33, %v519_v34 }
 0x2d7   :  { %v800_v36 = vpop.f32.mrf.mxu1 }
 0x2d8   :  { %v523_v37 = vmax.f32 %v520_v35, 0.0 }
 0x2da   :  { %810 = vmatmul.mubr.msk.f32.vlgmr.msra.gmra.mxu0 %vm535_vm5, %v523_v37 }
 0x2db   :  { %816 = vmatprep.mubr.msk.f32.mxu0 %vm842_vm2, %v841_v17  ;;  %813 = vmatpush3.msra.mxu0 %v611_v38  ;;  %vm692_vm2 = vcmask 15360  }
 0x2dc   :  { %814 = vmatprep.subr.mxu0 %v841_v17 }
 0x2dd   :  { %815 = vmatpush3.msra.mxu0 %v610_v39 }
 0x39a   :  { %v605_v41 = vpop.f32.mrf.mxu0 }
 0x39b   :  { %v606_v42 = vadd.f32 %v751_v40, %v605_v41 }
 0x39c   :  { %v811_v43 = vpop.f32.mrf.mxu0 }
 0x39d   :  { %v609_v44 = vmax.f32 %v606_v42, 0.0 }
 0x39f   :  { %817 = vmatmul.mubr.msk.f32.vlgmr.msra.gmra.mxu0 %vm334_vm3, %v609_v44 }
 0x45f   :  { %v688_v46 = vpop.f32.mrf.mxu0 }
 0x460   :  { %v689_v47 = vadd.f32 %v753_v45, %v688_v46 }
 0x461   :  { %v818_v48 = vpop.f32.mrf.mxu0 }
 0x462   :  { %693 = vst.msk [vmem:[%s1231_s12] sm:$0xff] %vm692_vm2, %v689_v47 }
 0x463   :  { %698 = vsyncpa [#allocation3], 1 }

</bundles_post_ra>
